<compile_context>
chip_gen: v7x
topology: tpu7x:2x2x1
jax: 0.10.0
libtpu: 0.0.40
codegen_flags: <defaults>
</compile_context>

<pallas_src>
import jax
import jax.numpy as jnp
from jax.experimental import pallas as pl
from jax.experimental.pallas import tpu as pltpu


DROPOUT_P = 0.5
BN_EPS = 1e-5
F_IN = 73
HIDDEN = 128
F_OUT = 5


def net_kernel(x_ref, w1_ref, pp_ref, mask_ref, w2_ref, o_ref):
    # pp_ref rows: 0 = b1, 1 = gamma, 2 = beta, 3 = b2 (all padded to 128 lanes)
    b1 = pp_ref[0:1, :]
    gamma = pp_ref[1:2, :]
    beta = pp_ref[2:3, :]
    b2 = pp_ref[3:4, :]

    # fc1: [B,128] @ [128,128] + [1,128]  (K padded 73->128 with zeros)
    h = jnp.dot(x_ref[...], w1_ref[...],
                preferred_element_type=jnp.float32) + b1

    # ReLU
    h = jnp.maximum(h, 0.0)

    # Dropout (training=True, p=0.5): mask is precomputed, already scaled by
    # 1/(1-p) on kept elements and 0 on dropped ones.
    h = h * mask_ref[...]

    # BatchNorm1d (training mode): per-feature batch mean / biased variance,
    # computed in a single pass over h.
    inv_b = 1.0 / h.shape[0]
    s = jnp.sum(h, axis=0, keepdims=True)
    s2 = jnp.sum(h * h, axis=0, keepdims=True)
    mean = s * inv_b
    var = s2 * inv_b - mean * mean
    hn = (h - mean) * jax.lax.rsqrt(var + BN_EPS)
    hn = hn * gamma + beta

    # fc2: [B,128] @ [128,128] + [1,128]  (N padded 5->128 with zeros)
    o_ref[...] = jnp.dot(hn, w2_ref[...],
                         preferred_element_type=jnp.float32) + b2


def net_forward(x, params, seed):
    """x: f32[B, 73]; params: dict of fc1/bn/fc2 params; seed: python int."""
    B, F = x.shape
    assert F == F_IN

    # ---- lane/sublane-dense padding (all pads are exact zeros) ----
    x_pad = jnp.pad(x, ((0, 0), (0, HIDDEN - F_IN)))                 # [B,128]
    w1t = jnp.pad(params["w1"].T, ((0, HIDDEN - F_IN), (0, 0)))      # [128,128]
    w2t = jnp.pad(params["w2"].T, ((0, 0), (0, HIDDEN - F_OUT)))     # [128,128]
    b2_pad = jnp.pad(params["b2"], (0, HIDDEN - F_OUT))              # [128]

    # b1 / gamma / beta / b2 as one [4,128] slab (single small DMA).
    pp = jnp.stack([params["b1"], params["gamma"], params["beta"], b2_pad],
                   axis=0).astype(jnp.float32)                       # [4,128]

    # Dropout keep-mask, deterministic from `seed`, pre-scaled by 1/(1-p).
    # TODO(synk): PyTorch's RNG stream is not reproduced bit-for-bit, only the
    # Bernoulli(1-p) / inverted-scaling semantics of F.dropout.
    dkey = jax.random.PRNGKey(seed)
    keep = jax.random.bernoulli(dkey, 1.0 - DROPOUT_P, (B, HIDDEN))
    mask = keep.astype(jnp.float32) * (1.0 / (1.0 - DROPOUT_P))      # [B,128]

    full = lambda shape: pl.BlockSpec(shape, lambda i: tuple(0 for _ in shape))

    out_pad = pl.pallas_call(
        net_kernel,
        out_shape=jax.ShapeDtypeStruct((B, HIDDEN), jnp.float32),
        grid_spec=pltpu.PrefetchScalarGridSpec(
            num_scalar_prefetch=0,
            grid=(1,),
            in_specs=[
                full(x_pad.shape),    # x (K padded)
                full(w1t.shape),      # w1^T (K padded)
                full(pp.shape),       # [b1; gamma; beta; b2]
                full(mask.shape),     # dropout mask (pre-scaled)
                full(w2t.shape),      # w2^T (N padded)
            ],
            out_specs=full((B, HIDDEN)),
        ),
        compiler_params=pltpu.CompilerParams(
            dimension_semantics=("arbitrary",)),
    )(x_pad, w1t, pp, mask, w2t)

    # Padded output columns are exact zeros; keep only the real 5 features.
    return out_pad[:, :F_OUT]


def init_params(key):
    """Deterministic init mimicking PyTorch's Linear default U(-1/sqrt(fan_in), +)."""
    k1, k2, k3, k4, k5, k6 = jax.random.split(key, 6)
    lim1 = 1.0 / jnp.sqrt(float(F_IN))
    lim2 = 1.0 / jnp.sqrt(float(HIDDEN))
    return {
        "w1": jax.random.uniform(k1, (HIDDEN, F_IN), jnp.float32, -lim1, lim1),
        "b1": jax.random.uniform(k2, (HIDDEN,), jnp.float32, -lim1, lim1),
        # BatchNorm1d affine params (default gamma=1, beta=0; perturbed
        # slightly so the affine path is exercised).
        "gamma": 1.0 + 0.01 * jax.random.normal(k3, (HIDDEN,), jnp.float32),
        "beta": 0.01 * jax.random.normal(k4, (HIDDEN,), jnp.float32),
        "w2": jax.random.uniform(k5, (F_OUT, HIDDEN), jnp.float32, -lim2, lim2),
        "b2": jax.random.uniform(k6, (F_OUT,), jnp.float32, -lim2, lim2),
    }


if __name__ == "__main__":
    key = jax.random.PRNGKey(0)
    pkey, xkey = jax.random.split(key)
    params = init_params(pkey)

    B = 8
    x = jax.random.normal(xkey, (B, F_IN), jnp.float32)

    out = net_forward(x, params, seed=1234)
    out = jax.block_until_ready(out)
    assert out.shape == (B, F_OUT) and out.dtype == jnp.float32
    assert bool(jnp.all(jnp.isfinite(out)))
    print("KERNEL_OK")
</pallas_src>

<mosaic_0001>
module attributes {stable_mosaic.version = 11 : i64} {
  func.func @net_kernel(%arg0: i32, %arg1: memref<8x128xf32, #tpu.memory_space<vmem>>, %arg2: memref<128x128xf32, #tpu.memory_space<vmem>>, %arg3: memref<4x128xf32, #tpu.memory_space<vmem>>, %arg4: memref<8x128xf32, #tpu.memory_space<vmem>>, %arg5: memref<128x128xf32, #tpu.memory_space<vmem>>, %arg6: memref<8x128xf32, #tpu.memory_space<vmem>>) attributes {dimension_semantics = [#tpu.dimension_semantics<arbitrary>], iteration_bounds = array<i64: 1>, scalar_prefetch = 0 : i64, scratch_operands = 0 : i64, tpu.core_type = #tpu.core_type<tc>, window_params = [{pipeline_mode = #tpu.pipeline_mode<synchronous>, transform_indices = @transform_0, window_bounds = array<i64: 8, 128>}, {pipeline_mode = #tpu.pipeline_mode<synchronous>, transform_indices = @transform_1, window_bounds = array<i64: 128, 128>}, {pipeline_mode = #tpu.pipeline_mode<synchronous>, transform_indices = @transform_2, window_bounds = array<i64: 4, 128>}, {pipeline_mode = #tpu.pipeline_mode<synchronous>, transform_indices = @transform_3, window_bounds = array<i64: 8, 128>}, {pipeline_mode = #tpu.pipeline_mode<synchronous>, transform_indices = @transform_4, window_bounds = array<i64: 128, 128>}, {pipeline_mode = #tpu.pipeline_mode<synchronous>, transform_indices = @transform_5, window_bounds = array<i64: 8, 128>}]} {
    %c0 = arith.constant 0 : index
    %c0_0 = arith.constant 0 : index
    %0 = vector.load %arg3[%c0, %c0_0] : memref<4x128xf32, #tpu.memory_space<vmem>>, vector<1x128xf32>
    %c1 = arith.constant 1 : index
    %c0_1 = arith.constant 0 : index
    %1 = vector.load %arg3[%c1, %c0_1] : memref<4x128xf32, #tpu.memory_space<vmem>>, vector<1x128xf32>
    %c2 = arith.constant 2 : index
    %c0_2 = arith.constant 0 : index
    %2 = vector.load %arg3[%c2, %c0_2] : memref<4x128xf32, #tpu.memory_space<vmem>>, vector<1x128xf32>
    %c3 = arith.constant 3 : index
    %c0_3 = arith.constant 0 : index
    %3 = vector.load %arg3[%c3, %c0_3] : memref<4x128xf32, #tpu.memory_space<vmem>>, vector<1x128xf32>
    %c0_4 = arith.constant 0 : index
    %c0_5 = arith.constant 0 : index
    %4 = vector.load %arg1[%c0_4, %c0_5] : memref<8x128xf32, #tpu.memory_space<vmem>>, vector<8x128xf32>
    %c0_6 = arith.constant 0 : index
    %c0_7 = arith.constant 0 : index
    %5 = vector.load %arg2[%c0_6, %c0_7] : memref<128x128xf32, #tpu.memory_space<vmem>>, vector<128x128xf32>
    %cst = arith.constant dense<0.000000e+00> : vector<8x128xf32>
    %6 = tpu.matmul %4, %5, %cst {dimension_numbers = #tpu.dot_dimension_numbers<[1], [0], [0], [1], [0, 0, 1, 1], [], []>} : vector<8x128xf32>, vector<128x128xf32>, vector<8x128xf32> -> vector<8x128xf32>
    %7 = vector.broadcast %0 : vector<1x128xf32> to vector<8x128xf32>
    %8 = arith.addf %6, %7 : vector<8x128xf32>
    %cst_8 = arith.constant 0.000000e+00 : f32
    %9 = vector.broadcast %cst_8 : f32 to vector<8x128xf32>
    %10 = arith.maximumf %8, %9 : vector<8x128xf32>
    %c0_9 = arith.constant 0 : index
    %c0_10 = arith.constant 0 : index
    %11 = vector.load %arg4[%c0_9, %c0_10] : memref<8x128xf32, #tpu.memory_space<vmem>>, vector<8x128xf32>
    %12 = arith.mulf %10, %11 : vector<8x128xf32>
    %cst_11 = arith.constant dense<0.000000e+00> : vector<128xf32>
    %13 = vector.multi_reduction <add>, %12, %cst_11 [0] : vector<8x128xf32> to vector<128xf32>
    %14 = vector.shape_cast %13 : vector<128xf32> to vector<1x128xf32>
    %15 = arith.mulf %12, %12 : vector<8x128xf32>
    %cst_12 = arith.constant dense<0.000000e+00> : vector<128xf32>
    %16 = vector.multi_reduction <add>, %15, %cst_12 [0] : vector<8x128xf32> to vector<128xf32>
    %17 = vector.shape_cast %16 : vector<128xf32> to vector<1x128xf32>
    %cst_13 = arith.constant 1.250000e-01 : f32
    %18 = vector.broadcast %cst_13 : f32 to vector<1x128xf32>
    %19 = arith.mulf %14, %18 : vector<1x128xf32>
    %cst_14 = arith.constant 1.250000e-01 : f32
    %20 = vector.broadcast %cst_14 : f32 to vector<1x128xf32>
    %21 = arith.mulf %17, %20 : vector<1x128xf32>
    %22 = arith.mulf %19, %19 : vector<1x128xf32>
    %23 = arith.subf %21, %22 : vector<1x128xf32>
    %24 = vector.broadcast %19 : vector<1x128xf32> to vector<8x128xf32>
    %25 = arith.subf %12, %24 : vector<8x128xf32>
    %cst_15 = arith.constant 9.99999974E-6 : f32
    %26 = vector.broadcast %cst_15 : f32 to vector<1x128xf32>
    %27 = arith.addf %23, %26 : vector<1x128xf32>
    %28 = math.rsqrt %27 : vector<1x128xf32>
    %29 = vector.broadcast %28 : vector<1x128xf32> to vector<8x128xf32>
    %30 = arith.mulf %25, %29 : vector<8x128xf32>
    %31 = vector.broadcast %1 : vector<1x128xf32> to vector<8x128xf32>
    %32 = arith.mulf %30, %31 : vector<8x128xf32>
    %33 = vector.broadcast %2 : vector<1x128xf32> to vector<8x128xf32>
    %34 = arith.addf %32, %33 : vector<8x128xf32>
    %c0_16 = arith.constant 0 : index
    %c0_17 = arith.constant 0 : index
    %35 = vector.load %arg5[%c0_16, %c0_17] : memref<128x128xf32, #tpu.memory_space<vmem>>, vector<128x128xf32>
    %cst_18 = arith.constant dense<0.000000e+00> : vector<8x128xf32>
    %36 = tpu.matmul %34, %35, %cst_18 {dimension_numbers = #tpu.dot_dimension_numbers<[1], [0], [0], [1], [0, 0, 1, 1], [], []>} : vector<8x128xf32>, vector<128x128xf32>, vector<8x128xf32> -> vector<8x128xf32>
    %37 = vector.broadcast %3 : vector<1x128xf32> to vector<8x128xf32>
    %38 = arith.addf %36, %37 : vector<8x128xf32>
    %c0_19 = arith.constant 0 : index
    %c0_20 = arith.constant 0 : index
    %39 = vector.load %arg6[%c0_19, %c0_20] : memref<8x128xf32, #tpu.memory_space<vmem>>, vector<8x128xf32>
    tpu.vector_store %arg6[%c0_19, %c0_20], %38 {strides = array<i32>} : memref<8x128xf32, #tpu.memory_space<vmem>>, vector<8x128xf32>,
    return
  }
  func.func @transform_0(%arg0: i32) -> (i32, i32) {
    %c0_i32 = arith.constant 0 : i32
    %c0_i32_0 = arith.constant 0 : i32
    %c0_i32_1 = arith.constant 0 : i32
    return %c0_i32, %c0_i32_0 : i32, i32
  }
  func.func @transform_1(%arg0: i32) -> (i32, i32) {
    %c0_i32 = arith.constant 0 : i32
    %c0_i32_0 = arith.constant 0 : i32
    %c0_i32_1 = arith.constant 0 : i32
    return %c0_i32, %c0_i32_0 : i32, i32
  }
  func.func @transform_2(%arg0: i32) -> (i32, i32) {
    %c0_i32 = arith.constant 0 : i32
    %c0_i32_0 = arith.constant 0 : i32
    %c0_i32_1 = arith.constant 0 : i32
    return %c0_i32, %c0_i32_0 : i32, i32
  }
  func.func @transform_3(%arg0: i32) -> (i32, i32) {
    %c0_i32 = arith.constant 0 : i32
    %c0_i32_0 = arith.constant 0 : i32
    %c0_i32_1 = arith.constant 0 : i32
    return %c0_i32, %c0_i32_0 : i32, i32
  }
  func.func @transform_4(%arg0: i32) -> (i32, i32) {
    %c0_i32 = arith.constant 0 : i32
    %c0_i32_0 = arith.constant 0 : i32
    %c0_i32_1 = arith.constant 0 : i32
    return %c0_i32, %c0_i32_0 : i32, i32
  }
  func.func @transform_5(%arg0: i32) -> (i32, i32) {
    %c0_i32 = arith.constant 0 : i32
    %c0_i32_0 = arith.constant 0 : i32
    %c0_i32_1 = arith.constant 0 : i32
    return %c0_i32, %c0_i32_0 : i32, i32
  }
}

</mosaic_0001>

<bundles_post_ra>
// kernel: tpu_custom_call.1
= control target key start
LH: loop header
LB: loop body
LE: loop exit
PB: predicated region body
PF: predicated region fallthrough
CT: control target
= control target key end

     0   :  { %10 = vsyncpa [#allocation3], 0  ;;  %s720_s0 = inlined_call_operand.hbm [shape: f32[8,128], index: 0, kind: input, shape index: {}]   ;;  %s721_s1 = inlined_call_operand.hbm [shape: f32[128,128], index: 1, kind: input, shape index: {}]   ;;  %s722_s2 = inlined_call_operand.hbm [shape: f32[4,128], index: 2, kind: input, shape index: {}]   ;;  %s723_s3 = inlined_call_operand.vmem [shape: f32[8,128], index: 3, kind: input, shape index: {}]   ;;  %s724_s4 = inlined_call_operand.hbm [shape: f32[128,128], index: 4, kind: input, shape index: {}]   ;;  %s725_s5 = inlined_call_operand.hbm [shape: f32[8,128], index: 5, kind: output, shape index: {}]  }
   0x1   :  { %11 = vsyncpa [#allocation6], 0 }
   0x2   :  { %12 = vsyncpa [#allocation9], 0 }
   0x3   :  { %13 = vsyncpa [#allocation4], 0  ;;  %s595_s18 = smov [#allocation5]   ;;  %s477_s22 = scalar_lea.hbm %s721_s1, 2048 }
   0x4   :  { %s29_s19 = sshll.u32 %s595_s18, 4  ;;  %p478_p0 = scmp.ne.s32.totalorder %s721_s1, %s477_s22  ;;  %s30_s19 = int_to_ptr.vmem [resolvable:$true] %s29_s19 }
   0x5   :  { %p481_p1 = scmp.lt.u32.totalorder %s477_s22, %s721_s1 }
   0x7   :  { %p483_p2 = pnand %p481_p1, %p478_p0 }
   0x9   :  { %486 = shalt.err (!%p483_p2)
}
   0xa   :  { %s487_s27 = scalar_lea.vmem %s30_s19, 2048  ;;  %p492_p4 = scmp.lt.s32.totalorder %s30_s19, %s30_s19 }
   0xb   :  { %p488_p3 = scmp.ne.s32.totalorder %s30_s19, %s487_s27  ;;  %p493_p5 = scmp.lt.s32.totalorder %s487_s27, %s487_s27 }
   0xd   :  { %p494_p6 = por %p493_p5, %p492_p4 }
   0xf   :  { %p495_p7 = pnand %p494_p6, %p488_p3 }
  0x11   :  { %498 = shalt.err (!%p495_p7)
}
  0x12   :  { %s596_s28 = smov 128   ;;  %s597_s29 = smov 8  }
  0x13   :  { %35 = dma.hbm_to_vmem [thread:$0]  %s721_s1, 2048, %s30_s19, [#allocation6], %s596_s28, %s596_s28, %s597_s29  }
  0x14   :  { %s598_s7 = smov [#allocation2]   ;;  %s599_s9 = smov [#allocation7]  }
  0x15   :  { %s20_s8 = sshll.u32 %s598_s7, 4  ;;  %s42_s10 = sshll.u32 %s599_s9, 4  ;;  %s21_s8 = int_to_ptr.vmem [resolvable:$true] %s20_s8  ;;  %s43_s10 = int_to_ptr.vmem [resolvable:$true] %s42_s10 }
  0x16   :  { %s499_s13 = scalar_lea.hbm %s720_s0, 128 }
  0x17   :  { %p500_p8 = scmp.ne.s32.totalorder %s720_s0, %s499_s13  ;;  %p503_p9 = scmp.lt.u32.totalorder %s499_s13, %s720_s0 }
  0x19   :  { %p505_p10 = pnand %p503_p9, %p500_p8 }
  0x1b   :  { %508 = shalt.err (!%p505_p10)
}
  0x1c   :  { %s509_s1 = scalar_lea.vmem %s21_s8, 128  ;;  %p514_p12 = scmp.lt.s32.totalorder %s21_s8, %s21_s8 }
  0x1d   :  { %p510_p11 = scmp.ne.s32.totalorder %s21_s8, %s509_s1  ;;  %p515_p13 = scmp.lt.s32.totalorder %s509_s1, %s509_s1 }
  0x1f   :  { %p516_p0 = por %p515_p13, %p514_p12 }
  0x21   :  { %p517_p1 = pnand %p516_p0, %p510_p11 }
  0x23   :  { %520 = shalt.err (!%p517_p1)
}
  0x24   :  { %23 = dma.hbm_to_vmem [thread:$0]  %s720_s0, 128, %s21_s8, [#allocation3]  }
  0x25   :  { %s521_s22 = scalar_lea.hbm %s722_s2, 64 }
  0x26   :  { %p522_p2 = scmp.ne.s32.totalorder %s722_s2, %s521_s22  ;;  %p525_p3 = scmp.lt.u32.totalorder %s521_s22, %s722_s2 }
  0x28   :  { %p527_p4 = pnand %p525_p3, %p522_p2 }
  0x2a   :  { %530 = shalt.err (!%p527_p4)
}
  0x2b   :  { %s531_s27 = scalar_lea.vmem %s43_s10, 64  ;;  %p536_p6 = scmp.lt.s32.totalorder %s43_s10, %s43_s10 }
  0x2c   :  { %p532_p5 = scmp.ne.s32.totalorder %s43_s10, %s531_s27  ;;  %p537_p7 = scmp.lt.s32.totalorder %s531_s27, %s531_s27 }
  0x2e   :  { %p538_p8 = por %p537_p7, %p536_p6 }
  0x30   :  { %p539_p9 = pnand %p538_p8, %p532_p5 }
  0x32   :  { %542 = shalt.err (!%p539_p9)
}
  0x33   :  { %45 = dma.hbm_to_vmem [thread:$0]  %s722_s2, 64, %s43_s10, [#allocation6]  }
  0x34   :  { %s600_s6 = smov [#allocation8]   ;;  %s543_s11 = scalar_lea.hbm %s724_s4, 2048 }
  0x35   :  { %s53_s7 = sshll.u32 %s600_s6, 4  ;;  %p544_p10 = scmp.ne.s32.totalorder %s724_s4, %s543_s11  ;;  %s54_s7 = int_to_ptr.vmem [resolvable:$true] %s53_s7 }
  0x36   :  { %p547_p11 = scmp.lt.u32.totalorder %s543_s11, %s724_s4 }
  0x38   :  { %p549_p12 = pnand %p547_p11, %p544_p10 }
  0x3a   :  { %552 = shalt.err (!%p549_p12)
}
  0x3b   :  { %s553_s16 = scalar_lea.vmem %s54_s7, 2048  ;;  %p558_p0 = scmp.lt.s32.totalorder %s54_s7, %s54_s7 }
  0x3c   :  { %p554_p13 = scmp.ne.s32.totalorder %s54_s7, %s553_s16  ;;  %p559_p1 = scmp.lt.s32.totalorder %s553_s16, %s553_s16 }
  0x3e   :  { %p560_p2 = por %p559_p1, %p558_p0 }
  0x40   :  { %p561_p3 = pnand %p560_p2, %p554_p13 }
  0x42   :  { %564 = shalt.err (!%p561_p3)
}
  0x43   :  { %59 = dma.hbm_to_vmem [thread:$0]  %s724_s4, 2048, %s54_s7, [#allocation9], %s596_s28, %s596_s28, %s597_s29  }
  0x44   :  { %587 = dma.done.wait [#allocation3], 128  }
  0x45   :  { %588 = vsyncadd [#allocation3], 4294967168 }
  0x46   :  { %589 = dma.done.wait [#allocation6], 2112  }
  0x47   :  { %590 = vsyncadd [#allocation6], 4294965184 }
  0x48   :  { %591 = dma.done.wait [#allocation9], 2048  }
  0x49   :  { %592 = vsyncadd [#allocation9], 4294965248  ;;  %v601_v0 = vmov 0.0|0.0   ;;  %vm602_vm0 = vmmov 0   ;;  %v603_v1 = vmov 0.0   ;;  %v77_v2 = vld [vmem:[#allocation5] sm:$0xff] }
  0x4a   :  { %417 = vmatprep.subr.bf16.mxu0 %v601_v0  ;;  %379 = vmatprep.mubr.msk.f32.mxu0 %vm602_vm0, %v603_v1  ;;  %v78_v3 = vld [vmem:[#allocation5 + $0x8] sm:$0xff]  ;;  %v79_v4 = vld [vmem:[#allocation5 + $0x10] sm:$0xff]  ;;  %v80_v6 = vld [vmem:[#allocation5 + $0x18] sm:$0xff] }
  0x4b   :  { %441 = vmatprep.subr.bf16.mxu1 %v601_v0  ;;  %414 = vmatprep.mubr.msk.f32.mxu1 %vm602_vm0, %v603_v1  ;;  %v418_v5 = vpack.c.bf16 %v78_v3, %v77_v2  ;;  %v421_v7 = vpack.c.bf16 %v80_v6, %v79_v4  ;;  %v81_v8 = vld [vmem:[#allocation5 + $0x20] sm:$0xff]  ;;  %v82_v9 = vld [vmem:[#allocation5 + $0x28] sm:$0xff]  ;;  %v83_v11 = vld [vmem:[#allocation5 + $0x30] sm:$0xff] }
  0x4c   :  { %v424_v10 = vpack.c.bf16 %v82_v9, %v81_v8  ;;  %v84_v12 = vld [vmem:[#allocation5 + $0x38] sm:$0xff]  ;;  %v85_v14 = vld [vmem:[#allocation5 + $0x40] sm:$0xff]  ;;  %v86_v15 = vld [vmem:[#allocation5 + $0x48] sm:$0xff] }
  0x4d   :  { %419 = vmatpush3.bf16.msra.mxu0 %v418_v5  ;;  %v427_v13 = vpack.c.bf16 %v84_v12, %v83_v11  ;;  %v430_v16 = vpack.c.bf16 %v86_v15, %v85_v14  ;;  %v87_v17 = vld [vmem:[#allocation5 + $0x50] sm:$0xff]  ;;  %v88_v18 = vld [vmem:[#allocation5 + $0x58] sm:$0xff]  ;;  %v89_v20 = vld [vmem:[#allocation5 + $0x60] sm:$0xff] }
  0x4e   :  { %420 = vmatprep.subr.bf16.mxu0 %v601_v0  ;;  %v433_v19 = vpack.c.bf16 %v88_v18, %v87_v17  ;;  %v90_v21 = vld [vmem:[#allocation5 + $0x68] sm:$0xff]  ;;  %v91_v23 = vld [vmem:[#allocation5 + $0x70] sm:$0xff]  ;;  %v92_v24 = vld [vmem:[#allocation5 + $0x78] sm:$0xff] }
  0x4f   :  { %v436_v22 = vpack.c.bf16 %v90_v21, %v89_v20  ;;  %v439_v25 = vpack.c.bf16 %v92_v24, %v91_v23  ;;  %v76_v26 = vld [vmem:[#allocation2] sm:$0xff]  ;;  %v201_v27 = vld [vmem:[#allocation8] sm:$0xff]  ;;  %v202_v28 = vld [vmem:[#allocation8 + $0x8] sm:$0xff] }
  0x50   :  { %v442_v29 = vpack.c.bf16 %v202_v28, %v201_v27  ;;  %v203_v30 = vld [vmem:[#allocation8 + $0x10] sm:$0xff]  ;;  %v204_v31 = vld [vmem:[#allocation8 + $0x18] sm:$0xff]  ;;  %v205_v33 = vld [vmem:[#allocation8 + $0x20] sm:$0xff] }
  0x51   :  { %422 = vmatpush3.bf16.msra.mxu0 %v421_v7  ;;  %v445_v32 = vpack.c.bf16 %v204_v31, %v203_v30  ;;  %v206_v34 = vld [vmem:[#allocation8 + $0x28] sm:$0xff]  ;;  %v207_v36 = vld [vmem:[#allocation8 + $0x30] sm:$0xff]  ;;  %v208_v37 = vld [vmem:[#allocation8 + $0x38] sm:$0xff] }
  0x52   :  { %423 = vmatprep.subr.bf16.mxu0 %v601_v0  ;;  %443 = vmatpush3.bf16.msra.mxu1 %v442_v29  ;;  %v448_v35 = vpack.c.bf16 %v206_v34, %v205_v33  ;;  %v451_v38 = vpack.c.bf16 %v208_v37, %v207_v36  ;;  %v209_v39 = vld [vmem:[#allocation8 + $0x40] sm:$0xff]  ;;  %v210_v40 = vld [vmem:[#allocation8 + $0x48] sm:$0xff]  ;;  %v211_v42 = vld [vmem:[#allocation8 + $0x50] sm:$0xff] }
  0x53   :  { %444 = vmatprep.subr.bf16.mxu1 %v601_v0  ;;  %v454_v41 = vpack.c.bf16 %v210_v40, %v209_v39  ;;  %v212_v43 = vld [vmem:[#allocation8 + $0x58] sm:$0xff]  ;;  %v213_v45 = vld [vmem:[#allocation8 + $0x60] sm:$0xff]  ;;  %v214_v46 = vld [vmem:[#allocation8 + $0x68] sm:$0xff] }
  0x54   :  { %v457_v44 = vpack.c.bf16 %v212_v43, %v211_v42  ;;  %v460_v47 = vpack.c.bf16 %v214_v46, %v213_v45  ;;  %v215_v48 = vld [vmem:[#allocation8 + $0x70] sm:$0xff]  ;;  %v216_v49 = vld [vmem:[#allocation8 + $0x78] sm:$0xff] }
  0x55   :  { %425 = vmatpush3.bf16.msra.mxu0 %v424_v10  ;;  %v463_v50 = vpack.c.bf16 %v216_v49, %v215_v48  ;;  %v309_v51 = vld [vmem:[#allocation7] ss:$0 sm:$0xff]  ;;  %v168_v55 = vld [vmem:[%s723_s3] sm:$0xff]  ;;  %v310_v14 = vld [vmem:[#allocation7 + $0x1] ss:$0 sm:$0xff]  ;;  %s604_s3 = smov [#allocation10]  }
  0x56   :  { %426 = vmatprep.subr.bf16.mxu0 %v601_v0  ;;  %446 = vmatpush3.bf16.msra.mxu1 %v445_v32  ;;  %s298_s29 = sshll.u32 %s604_s3, 4  ;;  %s299_s29 = int_to_ptr.vmem [resolvable:$true] %s298_s29 }
  0x57   :  { %447 = vmatprep.subr.bf16.mxu1 %v601_v0  ;;  %s565_s17 = scalar_lea.vmem %s299_s29, 128  ;;  %p570_p5 = scmp.lt.s32.totalorder %s299_s29, %s299_s29 }
  0x58   :  { %p566_p4 = scmp.ne.s32.totalorder %s299_s29, %s565_s17  ;;  %p571_p6 = scmp.lt.s32.totalorder %s565_s17, %s565_s17 }
  0x59   :  { %428 = vmatpush3.bf16.msra.mxu0 %v427_v13 }
  0x5a   :  { %429 = vmatprep.subr.bf16.mxu0 %v601_v0  ;;  %449 = vmatpush3.bf16.msra.mxu1 %v448_v35  ;;  %p572_p7 = por %p571_p6, %p570_p5 }
  0x5b   :  { %450 = vmatprep.subr.bf16.mxu1 %v601_v0 }
  0x5c   :  { %p573_p8 = pnand %p572_p7, %p566_p4 }
  0x5d   :  { %431 = vmatpush3.bf16.msra.mxu0 %v430_v16  ;;  %v311_v16 = vld [vmem:[#allocation7 + $0x2] ss:$0 sm:$0xff] }
  0x5e   :  { %432 = vmatprep.subr.bf16.mxu0 %v601_v0  ;;  %452 = vmatpush3.bf16.msra.mxu1 %v451_v38 }
  0x5f   :  { %453 = vmatprep.subr.bf16.mxu1 %v601_v0 }
  0x61   :  { %434 = vmatpush3.bf16.msra.mxu0 %v433_v19  ;;  %v312_v19 = vld [vmem:[#allocation7 + $0x3] ss:$0 sm:$0xff] }
  0x62   :  { %435 = vmatprep.subr.bf16.mxu0 %v601_v0  ;;  %455 = vmatpush3.bf16.msra.mxu1 %v454_v41 }
  0x63   :  { %456 = vmatprep.subr.bf16.mxu1 %v601_v0 }
  0x65   :  { %437 = vmatpush3.bf16.msra.mxu0 %v436_v22 }
  0x66   :  { %438 = vmatprep.subr.bf16.mxu0 %v601_v0  ;;  %458 = vmatpush3.bf16.msra.mxu1 %v457_v44 }
  0x67   :  { %459 = vmatprep.subr.bf16.mxu1 %v601_v0 }
  0x69   :  { %440 = vmatpush3.bf16.msra.mxu0 %v439_v25 }
  0x6a   :  { %461 = vmatpush3.bf16.msra.mxu1 %v460_v47 }
  0x6b   :  { %462 = vmatprep.subr.bf16.mxu1 %v601_v0 }
  0x6c   :  { %380 = vmatmul.mubr.f32.vlgmr.msra.gmra.mrb[0].mxu0 %v76_v26 }
  0x6e   :  { %464 = vmatpush3.bf16.msra.mxu1 %v463_v50 }
 0x13f   :  { %v163_v52 = vpop.f32.mrb[0].mxu0 }
 0x140   :  { %v164_v53 = vadd.f32 %v309_v51, %v163_v52  ;;  %v381_v54 = vpop.f32.mrb[1].mxu0 }
 0x142   :  { %v167_v56 = vmax.f32 %v164_v53, 0.0 }
 0x144   :  { %v169_v57 = vmul.f32 %v168_v55, %v167_v56 }
 0x146   :  { %v170_v58 = vrot.slane %v169_v57, 4  ;;  %v176_v59 = vmul.f32 %v169_v57, %v169_v57 }
 0x148   :  { %v171_v60 = vadd.f32 %v170_v58, %v169_v57  ;;  %v177_v61 = vrot.slane %v176_v59, 4 }
 0x14a   :  { %v172_v62 = vrot.slane %v171_v60, 2  ;;  %v178_v63 = vadd.f32 %v177_v61, %v176_v59 }
 0x14c   :  { %v173_v1 = vadd.f32 %v172_v62, %v171_v60  ;;  %v179_v2 = vrot.slane %v178_v63, 2 }
 0x14e   :  { %v180_v0 = vadd.f32 %v179_v2, %v178_v63  ;;  %v174_v3 = vrot.slane %v173_v1, 1 }
 0x150   :  { %v181_v4 = vrot.slane %v180_v0, 1  ;;  %v175_v5 = vadd.f32 %v174_v3, %v173_v1 }
 0x152   :  { %v182_v6 = vadd.f32 %v181_v4, %v180_v0  ;;  %v183_v7 = vmul.f32 0.125, %v175_v5 }
 0x154   :  { %v184_v8 = vmul.f32 0.125, %v182_v6  ;;  %v185_v9 = vmul.f32 %v183_v7, %v183_v7  ;;  %v187_v12 = vsub.f32 %v169_v57, %v183_v7 }
 0x156   :  { %v186_v10 = vsub.f32 %v184_v8, %v185_v9 }
 0x158   :  { %v188_v11 = vadd.f32 1e-05, %v186_v10 }
 0x15a   :  { %475 = vrsqrt.f32 %v188_v11 }
 0x164   :  { %v476_v13 = vpop.eup %475 }
 0x165   :  { %v190_v15 = vmul.f32 %v476_v13, %v187_v12 }
 0x167   :  { %v195_v17 = vmul.f32 %v310_v14, %v190_v15 }
 0x169   :  { %v200_v18 = vadd.f32 %v311_v16, %v195_v17 }
 0x16b   :  { %415 = vmatmul.mubr.f32.vlgmr.msra.gmra.mrb[0].mxu1 %v200_v18 }
 0x23e   :  { %v287_v20 = vpop.f32.mrb[0].mxu1 }
 0x23f   :  { %v288_v21 = vadd.f32 %v312_v19, %v287_v20  ;;  %v416_v22 = vpop.f32.mrb[1].mxu1 }
 0x241   :  { %291 = vst [vmem:[#allocation10] sm:$0xff] %v288_v21 }
 0x242   :  { %576 = shalt.err (!%p573_p8)
}
 0x243   :  { %s577_s19 = scalar_lea.hbm %s725_s5, 128 }
 0x244   :  { %p578_p9 = scmp.ne.s32.totalorder %s725_s5, %s577_s19  ;;  %p581_p10 = scmp.lt.u32.totalorder %s577_s19, %s725_s5 }
 0x246   :  { %p583_p11 = pnand %p581_p10, %p578_p9 }
 0x248   :  { %586 = shalt.err (!%p583_p11)
}
 0x249   :  { %301 = dma.vmem_to_hbm [thread:$0]  %s299_s29, 128, %s725_s5, [#allocation4]  }
 0x24a   :  { %593 = dma.done.wait [#allocation4], 128  }
 0x24b   :  { %594 = vsyncadd [#allocation4], 4294967168 }
 0x24c   :  { %305 = vsyncpa [#allocation3], 1 }
 0x24d   :  { %306 = vsyncpa [#allocation6], 1 }
 0x24e   :  { %307 = vsyncpa [#allocation9], 1 }
 0x24f   :  { %308 = vsyncpa [#allocation4], 1 }

</bundles_post_ra>
